<compile_context>
chip_gen: v5e
topology: v5e:2x2
jax: 0.10.0
libtpu: 0.0.40
codegen_flags: <defaults>
</compile_context>

<pallas_src>
import math
from functools import partial

import jax
import jax.numpy as jnp
from jax.experimental import pallas as pl
from jax.experimental.pallas import tpu as pltpu

LN_EPS = 1e-5                      # PyTorch nn.LayerNorm default
VMEM_LIMIT_BYTES = 48 * 1024 * 1024  # headroom under v7x's 64 MiB physical VMEM


# --------------------------------------------------------------------------
# small helpers
# --------------------------------------------------------------------------
def _round_up(x: int, m: int) -> int:
    return ((x + m - 1) // m) * m


def _pad_to(a, shape):
    pads = [(0, t - s) for s, t in zip(a.shape, shape)]
    if all(p == (0, 0) for p in pads):
        return a
    return jnp.pad(a, pads)


# --------------------------------------------------------------------------
# kernels
# --------------------------------------------------------------------------
def _linear_kernel(x_ref, w_ref, b_ref, o_ref):
    """One (TILE_M, K) x (K, N) tile:  y = x @ W + b."""
    y = jnp.dot(x_ref[...], w_ref[...], preferred_element_type=jnp.float32)
    o_ref[...] = (y + b_ref[...]).astype(o_ref.dtype)


def _linear_layernorm_kernel(x_ref, w_ref, b_ref, g_ref, beta_ref, o_ref, *, n_true):
    """Fused (x @ W + b) followed by LayerNorm over the true feature width."""
    y = jnp.dot(x_ref[...], w_ref[...], preferred_element_type=jnp.float32)
    y = y + b_ref[...]
    # Padded feature lanes of W / b are exactly zero -> y is zero there, so the
    # single-pass sums below only see the true lanes; divide by the TRUE width
    # so lane padding never corrupts the statistics.
    inv_n = 1.0 / float(n_true)
    s1 = jnp.sum(y, axis=-1, keepdims=True)
    s2 = jnp.sum(y * y, axis=-1, keepdims=True)
    mean = s1 * inv_n
    var = s2 * inv_n - mean * mean
    y_norm = (y - mean) * jax.lax.rsqrt(var + LN_EPS)
    # Padded gamma/beta lanes are zero -> padded output lanes stay 0 (lane-dense
    # store of zeros), wrapper slices them off.
    o_ref[...] = (y_norm * g_ref[...] + beta_ref[...]).astype(o_ref.dtype)


def _attention_kernel(q_ref, k_ref, v_ref, o_ref, attn_ref, *, scale, nkv_true):
    """One (batch*head, query-tile) block of softmax(q k^T * scale) @ v."""
    q = q_ref[0]                       # (TILE_N, D_pad)
    k = k_ref[0]                       # (NKV_pad, D_pad)
    v = v_ref[0]                       # (NKV_pad, D_pad)
    # Contract on the head dim without materialising k^T.
    s = jax.lax.dot_general(q, k, (((1,), (1,)), ((), ())),
                            preferred_element_type=jnp.float32) * scale
    col = jax.lax.broadcasted_iota(jnp.int32, s.shape, 1)
    s = jnp.where(col < nkv_true, s, -jnp.inf)   # mask zero-padded key lanes
    m = jnp.max(s, axis=-1, keepdims=True)
    p = jnp.exp(s - m)                            # exp(-inf) == 0 for padded keys
    attn = p / jnp.sum(p, axis=-1, keepdims=True)
    attn_ref[0] = attn.astype(attn_ref.dtype)
    o_ref[0] = jnp.dot(attn, v, preferred_element_type=jnp.float32).astype(o_ref.dtype)


# --------------------------------------------------------------------------
# pallas_call wrappers (pad -> grid -> slice)
# --------------------------------------------------------------------------
def _pallas_linear(x2d, w2d, b, *, tile_m_max=512):
    """x2d: (M, K), w2d: (K, N) [already input-major], b: (N,) -> (M, N)."""
    M, K = x2d.shape
    _, Nf = w2d.shape
    K_pad = _round_up(K, 128)
    N_pad = _round_up(Nf, 128)
    tile_m = min(tile_m_max, _round_up(M, 8))
    M_pad = _round_up(M, tile_m)

    x_p = _pad_to(x2d.astype(jnp.float32), (M_pad, K_pad))
    w_p = _pad_to(w2d.astype(jnp.float32), (K_pad, N_pad))
    b_p = _pad_to(b.reshape(1, Nf).astype(jnp.float32), (1, N_pad))

    out = pl.pallas_call(
        _linear_kernel,
        out_shape=jax.ShapeDtypeStruct((M_pad, N_pad), jnp.float32),
        grid=(M_pad // tile_m,),
        in_specs=[
            pl.BlockSpec((tile_m, K_pad), lambda i: (i, 0)),
            pl.BlockSpec((K_pad, N_pad), lambda i: (0, 0)),   # resident weight
            pl.BlockSpec((1, N_pad), lambda i: (0, 0)),
        ],
        out_specs=pl.BlockSpec((tile_m, N_pad), lambda i: (i, 0)),
        compiler_params=pltpu.CompilerParams(
            dimension_semantics=("parallel",),
            vmem_limit_bytes=VMEM_LIMIT_BYTES),
        cost_estimate=pl.CostEstimate(
            flops=2 * M_pad * K_pad * N_pad,
            transcendentals=0,
            bytes_accessed=4 * (M_pad * K_pad + K_pad * N_pad + M_pad * N_pad)),
    )(x_p, w_p, b_p)
    return out[:M, :Nf]


def _pallas_linear_layernorm(x2d, w2d, b, gamma, beta, *, tile_m_max=512):
    """(x2d @ w2d + b) then LayerNorm(gamma, beta) over the output features."""
    M, K = x2d.shape
    _, Nf = w2d.shape
    K_pad = _round_up(K, 128)
    N_pad = _round_up(Nf, 128)
    tile_m = min(tile_m_max, _round_up(M, 8))
    M_pad = _round_up(M, tile_m)

    x_p = _pad_to(x2d.astype(jnp.float32), (M_pad, K_pad))
    w_p = _pad_to(w2d.astype(jnp.float32), (K_pad, N_pad))
    b_p = _pad_to(b.reshape(1, Nf).astype(jnp.float32), (1, N_pad))
    g_p = _pad_to(gamma.reshape(1, Nf).astype(jnp.float32), (1, N_pad))
    beta_p = _pad_to(beta.reshape(1, Nf).astype(jnp.float32), (1, N_pad))

    kernel = partial(_linear_layernorm_kernel, n_true=Nf)
    out = pl.pallas_call(
        kernel,
        out_shape=jax.ShapeDtypeStruct((M_pad, N_pad), jnp.float32),
        grid=(M_pad // tile_m,),
        in_specs=[
            pl.BlockSpec((tile_m, K_pad), lambda i: (i, 0)),
            pl.BlockSpec((K_pad, N_pad), lambda i: (0, 0)),
            pl.BlockSpec((1, N_pad), lambda i: (0, 0)),
            pl.BlockSpec((1, N_pad), lambda i: (0, 0)),
            pl.BlockSpec((1, N_pad), lambda i: (0, 0)),
        ],
        out_specs=pl.BlockSpec((tile_m, N_pad), lambda i: (i, 0)),
        compiler_params=pltpu.CompilerParams(
            dimension_semantics=("parallel",),
            vmem_limit_bytes=VMEM_LIMIT_BYTES),
        cost_estimate=pl.CostEstimate(
            flops=2 * M_pad * K_pad * N_pad + 10 * M_pad * N_pad,
            transcendentals=M_pad,
            bytes_accessed=4 * (M_pad * K_pad + K_pad * N_pad + M_pad * N_pad)),
    )(x_p, w_p, b_p, g_p, beta_p)
    return out[:M, :Nf]


def _pallas_attention(q, k, v, *, scale, tile_n_max=512):
    """q: (B,h,N,d), k/v: (B,h,Nkv,d) -> (out (B,h,N,d), attn (B,h,N,Nkv))."""
    B, h, N, d = q.shape
    Nkv = k.shape[2]
    BH = B * h
    d_pad = _round_up(d, 128)
    nkv_pad = _round_up(Nkv, 128)
    tile_n = min(tile_n_max, _round_up(N, 8))
    n_pad = _round_up(N, tile_n)

    q_p = _pad_to(q.reshape(BH, N, d).astype(jnp.float32), (BH, n_pad, d_pad))
    k_p = _pad_to(k.reshape(BH, Nkv, d).astype(jnp.float32), (BH, nkv_pad, d_pad))
    v_p = _pad_to(v.reshape(BH, Nkv, d).astype(jnp.float32), (BH, nkv_pad, d_pad))

    kernel = partial(_attention_kernel, scale=float(scale), nkv_true=Nkv)
    out_p, attn_p = pl.pallas_call(
        kernel,
        out_shape=(jax.ShapeDtypeStruct((BH, n_pad, d_pad), jnp.float32),
                   jax.ShapeDtypeStruct((BH, n_pad, nkv_pad), jnp.float32)),
        grid=(BH, n_pad // tile_n),
        in_specs=[
            pl.BlockSpec((1, tile_n, d_pad), lambda i, j: (i, j, 0)),
            pl.BlockSpec((1, nkv_pad, d_pad), lambda i, j: (i, 0, 0)),
            pl.BlockSpec((1, nkv_pad, d_pad), lambda i, j: (i, 0, 0)),
        ],
        out_specs=(
            pl.BlockSpec((1, tile_n, d_pad), lambda i, j: (i, j, 0)),
            pl.BlockSpec((1, tile_n, nkv_pad), lambda i, j: (i, j, 0)),
        ),
        compiler_params=pltpu.CompilerParams(
            dimension_semantics=("parallel", "parallel"),
            vmem_limit_bytes=VMEM_LIMIT_BYTES),
        cost_estimate=pl.CostEstimate(
            flops=4 * BH * n_pad * nkv_pad * d_pad,
            transcendentals=BH * n_pad * nkv_pad,
            bytes_accessed=4 * BH * (2 * n_pad * d_pad + 2 * nkv_pad * d_pad
                                     + n_pad * nkv_pad)),
    )(q_p, k_p, v_p)

    out = out_p[:, :N, :d].reshape(B, h, N, d)
    attn = attn_p[:, :N, :Nkv].reshape(B, h, N, Nkv)
    return out, attn


# --------------------------------------------------------------------------
# module forward
# --------------------------------------------------------------------------
def efficient_self_attention(x, H, W, params, *, num_heads, sr_ratio, qk_scale=None):
    """Matches EfficientSelfAttention.forward (inference; dropout = identity).

    x: (B, N, C) with N == H*W (+1 if the first token is a global token).
    Returns (x_out (B, N, C), attn_weights (B, heads, N, N_kv)).
    """
    B, N, C = x.shape
    assert C % num_heads == 0
    head_dim = C // num_heads
    scale = float(qk_scale) if qk_scale is not None else head_dim ** (-0.5)
    num_patch = H * W

    if N == num_patch + 1:
        global_token = x[:, :1, :]
        patch_tokens = x[:, 1:, :]
    else:
        global_token = None
        patch_tokens = x

    # ---- q projection over all tokens (incl. global token). ---------------
    q2d = _pallas_linear(x.reshape(B * N, C), params["q_w"].T, params["q_b"])
    q = q2d.reshape(B, N, num_heads, head_dim).transpose(0, 2, 1, 3)

    # ---- spatial reduction of patch tokens (Conv2d k=s=sr) + LayerNorm. ---
    if sr_ratio > 1:
        sr = sr_ratio
        Hs, Ws = H // sr, W // sr
        # kernel_size == stride: non-overlapping patch projection, so im2col is
        # a pure reshape/transpose (feature order (c, kh, kw) matches
        # torch_conv_weight.reshape(C, C*sr*sr)).
        patches = patch_tokens.reshape(B, H, W, C)
        patches = patches.reshape(B, Hs, sr, Ws, sr, C)
        patches = patches.transpose(0, 1, 3, 5, 2, 4)           # (B,Hs,Ws,C,sr,sr)
        patches = patches.reshape(B * Hs * Ws, C * sr * sr)
        sr_w2d = params["sr_w"].reshape(C, C * sr * sr).T       # (K, C)
        kv_tokens = _pallas_linear_layernorm(
            patches, sr_w2d, params["sr_b"], params["norm_w"], params["norm_b"]
        ).reshape(B, Hs * Ws, C)
    else:
        kv_tokens = patch_tokens

    # kv is the same Linear for global and (reduced) patch tokens; torch
    # concatenates global first, so concatenate before the projection.
    if global_token is not None:
        kv_src = jnp.concatenate([global_token, kv_tokens], axis=1)
    else:
        kv_src = kv_tokens
    Nkv = kv_src.shape[1]

    kv2d = _pallas_linear(kv_src.reshape(B * Nkv, C), params["kv_w"].T, params["kv_b"])
    kv = kv2d.reshape(B, Nkv, 2, num_heads, head_dim).transpose(2, 0, 3, 1, 4)
    k, v = kv[0], kv[1]

    # ---- attention. --------------------------------------------------------
    # TODO(synk): attn_drop / proj_drop are inference-mode identity here; a
    # training-mode dropout would draw bits via pltpu.prng_random_bits.
    out, attn_weights = _pallas_attention(q, k, v, scale=scale)

    x_out = out.transpose(0, 2, 1, 3).reshape(B * N, C)
    x_out = _pallas_linear(x_out, params["proj_w"].T, params["proj_b"])
    x_out = x_out.reshape(B, N, C)
    return x_out, attn_weights


# --------------------------------------------------------------------------
# params + pure-JAX reference + demo
# --------------------------------------------------------------------------
def init_params(key, *, dim, sr_ratio):
    ks = jax.random.split(key, 10)
    p = {
        "q_w": 0.1 * jax.random.normal(ks[0], (dim, dim), jnp.float32),
        "q_b": 0.1 * jax.random.normal(ks[1], (dim,), jnp.float32),
        "kv_w": 0.1 * jax.random.normal(ks[2], (2 * dim, dim), jnp.float32),
        "kv_b": 0.1 * jax.random.normal(ks[3], (2 * dim,), jnp.float32),
        "proj_w": 0.1 * jax.random.normal(ks[4], (dim, dim), jnp.float32),
        "proj_b": 0.1 * jax.random.normal(ks[5], (dim,), jnp.float32),
    }
    if sr_ratio > 1:
        fan_out = sr_ratio * sr_ratio * dim
        p["sr_w"] = math.sqrt(2.0 / fan_out) * jax.random.normal(
            ks[6], (dim, dim, sr_ratio, sr_ratio), jnp.float32)
        p["sr_b"] = 0.1 * jax.random.normal(ks[7], (dim,), jnp.float32)
        p["norm_w"] = 1.0 + 0.1 * jax.random.normal(ks[8], (dim,), jnp.float32)
        p["norm_b"] = 0.1 * jax.random.normal(ks[9], (dim,), jnp.float32)
    return p


def _reference_forward(x, H, W, p, *, num_heads, sr_ratio):
    B, N, C = x.shape
    d = C // num_heads
    scale = d ** (-0.5)
    num_patch = H * W
    if N == num_patch + 1:
        g, patch = x[:, :1], x[:, 1:]
    else:
        g, patch = None, x
    q = x @ p["q_w"].T + p["q_b"]
    q = q.reshape(B, N, num_heads, d).transpose(0, 2, 1, 3)
    if sr_ratio > 1:
        p2d = patch.transpose(0, 2, 1).reshape(B, C, H, W)
        y = jax.lax.conv_general_dilated(
            p2d, p["sr_w"], window_strides=(sr_ratio, sr_ratio), padding="VALID",
            dimension_numbers=("NCHW", "OIHW", "NCHW"))
        y = y + p["sr_b"][None, :, None, None]
        tok = y.reshape(B, C, -1).transpose(0, 2, 1)
        mu = tok.mean(-1, keepdims=True)
        var = ((tok - mu) ** 2).mean(-1, keepdims=True)
        tok = (tok - mu) / jnp.sqrt(var + LN_EPS) * p["norm_w"] + p["norm_b"]
    else:
        tok = patch
    kv_src = jnp.concatenate([g, tok], axis=1) if g is not None else tok
    kv = kv_src @ p["kv_w"].T + p["kv_b"]
    Nkv = kv_src.shape[1]
    kv = kv.reshape(B, Nkv, 2, num_heads, d).transpose(2, 0, 3, 1, 4)
    k, v = kv[0], kv[1]
    s = jnp.einsum("bhnd,bhmd->bhnm", q, k) * scale
    attn = jax.nn.softmax(s, axis=-1)
    out = jnp.einsum("bhnm,bhmd->bhnd", attn, v)
    out = out.transpose(0, 2, 1, 3).reshape(B, N, C)
    out = out @ p["proj_w"].T + p["proj_b"]
    return out, attn


if __name__ == "__main__":
    # Small MiT-stage-like configuration: global token + 8x8 patch tokens.
    B, H, W = 2, 8, 8
    dim, num_heads, sr_ratio = 32, 2, 2
    N = H * W + 1

    key = jax.random.PRNGKey(0)
    k_x, k_p = jax.random.split(key)
    x = jax.random.normal(k_x, (B, N, dim), dtype=jnp.float32)
    params = init_params(k_p, dim=dim, sr_ratio=sr_ratio)

    x_out, attn_w = efficient_self_attention(
        x, H, W, params, num_heads=num_heads, sr_ratio=sr_ratio)
    x_out = jax.block_until_ready(x_out)
    attn_w = jax.block_until_ready(attn_w)

    with jax.default_matmul_precision("highest"):
        ref_out, ref_attn = _reference_forward(
            x, H, W, params, num_heads=num_heads, sr_ratio=sr_ratio)
        ref_out = jax.block_until_ready(ref_out)

    Nkv = 1 + (H // sr_ratio) * (W // sr_ratio)
    assert x_out.shape == (B, N, dim)
    assert attn_w.shape == (B, num_heads, N, Nkv)
    assert jnp.allclose(attn_w, ref_attn, atol=1e-4, rtol=1e-4), \
        float(jnp.max(jnp.abs(attn_w - ref_attn)))
    assert jnp.allclose(x_out, ref_out, atol=1e-4, rtol=1e-4), \
        float(jnp.max(jnp.abs(x_out - ref_out)))
    print("KERNEL_OK")
</pallas_src>

<mosaic_0001>
module attributes {stable_mosaic.version = 11 : i64} {
  func.func @_linear_kernel(%arg0: i32, %arg1: memref<136x128xf32, #tpu.memory_space<vmem>>, %arg2: memref<128x128xf32, #tpu.memory_space<vmem>>, %arg3: memref<1x128xf32, #tpu.memory_space<vmem>>, %arg4: memref<136x128xf32, #tpu.memory_space<vmem>>) attributes {dimension_semantics = [#tpu.dimension_semantics<parallel>], iteration_bounds = array<i64: 1>, scalar_prefetch = 0 : i64, scratch_operands = 0 : i64, tpu.core_type = #tpu.core_type<tc>, window_params = [{transform_indices = @transform_0, window_bounds = array<i64: 136, 128>}, {pipeline_mode = #tpu.pipeline_mode<synchronous>, transform_indices = @transform_1, window_bounds = array<i64: 128, 128>}, {pipeline_mode = #tpu.pipeline_mode<synchronous>, transform_indices = @transform_2, window_bounds = array<i64: 1, 128>}, {transform_indices = @transform_3, window_bounds = array<i64: 136, 128>}]} {
    %c0 = arith.constant 0 : index
    %c0_0 = arith.constant 0 : index
    %0 = vector.load %arg1[%c0, %c0_0] : memref<136x128xf32, #tpu.memory_space<vmem>>, vector<136x128xf32>
    %c0_1 = arith.constant 0 : index
    %c0_2 = arith.constant 0 : index
    %1 = vector.load %arg2[%c0_1, %c0_2] : memref<128x128xf32, #tpu.memory_space<vmem>>, vector<128x128xf32>
    %cst = arith.constant dense<0.000000e+00> : vector<136x128xf32>
    %2 = tpu.matmul %0, %1, %cst {dimension_numbers = #tpu.dot_dimension_numbers<[1], [0], [0], [1], [0, 0, 1, 1], [], []>} : vector<136x128xf32>, vector<128x128xf32>, vector<136x128xf32> -> vector<136x128xf32>
    %c0_3 = arith.constant 0 : index
    %c0_4 = arith.constant 0 : index
    %3 = vector.load %arg3[%c0_3, %c0_4] : memref<1x128xf32, #tpu.memory_space<vmem>>, vector<1x128xf32>
    %4 = vector.broadcast %3 : vector<1x128xf32> to vector<136x128xf32>
    %5 = arith.addf %2, %4 : vector<136x128xf32>
    %c0_5 = arith.constant 0 : index
    %c0_6 = arith.constant 0 : index
    %6 = vector.load %arg4[%c0_5, %c0_6] : memref<136x128xf32, #tpu.memory_space<vmem>>, vector<136x128xf32>
    tpu.vector_store %arg4[%c0_5, %c0_6], %5 {strides = array<i32>} : memref<136x128xf32, #tpu.memory_space<vmem>>, vector<136x128xf32>,
    return
  }
  func.func @transform_0(%arg0: i32) -> (i32, i32) {
    %c0_i32 = arith.constant 0 : i32
    %c0_i32_0 = arith.constant 0 : i32
    return %arg0, %c0_i32 : i32, i32
  }
  func.func @transform_1(%arg0: i32) -> (i32, i32) {
    %c0_i32 = arith.constant 0 : i32
    %c0_i32_0 = arith.constant 0 : i32
    %c0_i32_1 = arith.constant 0 : i32
    return %c0_i32, %c0_i32_0 : i32, i32
  }
  func.func @transform_2(%arg0: i32) -> (i32, i32) {
    %c0_i32 = arith.constant 0 : i32
    %c0_i32_0 = arith.constant 0 : i32
    %c0_i32_1 = arith.constant 0 : i32
    return %c0_i32, %c0_i32_0 : i32, i32
  }
  func.func @transform_3(%arg0: i32) -> (i32, i32) {
    %c0_i32 = arith.constant 0 : i32
    %c0_i32_0 = arith.constant 0 : i32
    return %arg0, %c0_i32 : i32, i32
  }
}

</mosaic_0001>

<bundles_post_ra>
// kernel: tpu_custom_call.1
= control target key start
LH: loop header
LB: loop body
LE: loop exit
PB: predicated region body
PF: predicated region fallthrough
CT: control target
= control target key end

     0   :  { %8 = vsyncpa [#allocation3], 0  ;;  %s367_s0 = inlined_call_operand.hbm [shape: f32[136,128], index: 0, kind: input, shape index: {}]   ;;  %s368_s1 = inlined_call_operand.hbm [shape: f32[128,128], index: 1, kind: input, shape index: {}]   ;;  %s369_s2 = inlined_call_operand.vmem [shape: f32[1,128], index: 2, kind: input, shape index: {}]   ;;  %s370_s3 = inlined_call_operand.hbm [shape: f32[136,128], index: 3, kind: output, shape index: {}]  }
   0x1   :  { %9 = vsyncpa [#allocation6], 0 }
   0x2   :  { %10 = vsyncpa [#allocation4], 0  ;;  %s15_s14 = sshll.u32 %s367_s0, 4  ;;  %s321_s15 = smov [#allocation2]   ;;  %s16_s14 = int_to_ptr.hbm [resolvable:$true] %s15_s14 }
   0x3   :  { %s17_s16 = sshll.u32 %s321_s15, 4  ;;  %s28_s19 = sshll.u32 %s368_s1, 4  ;;  %s18_s16 = int_to_ptr.vmem [resolvable:$true] %s17_s16  ;;  %s29_s19 = int_to_ptr.hbm [resolvable:$true] %s28_s19 }
   0x4   :  { %s322_s20 = smov 128   ;;  %s323_s21 = smov 8  }
   0x5   :  { %23 = dma.hbm_to_vmem [thread:$0]  %s16_s14, 2176, %s18_s16, [#allocation3], %s322_s20, %s322_s20, %s323_s21  }
   0x6   :  { %s324_s22 = smov [#allocation5]  }
   0x7   :  { %s30_s23 = sshll.u32 %s324_s22, 4  ;;  %s31_s23 = int_to_ptr.vmem [resolvable:$true] %s30_s23 }
   0x8   :  { %36 = dma.hbm_to_vmem [thread:$0]  %s29_s19, 2048, %s31_s23, [#allocation6], %s322_s20, %s322_s20, %s323_s21  }
   0x9   :  { %315 = dma.done.wait [#allocation3], 2176  }
   0xa   :  { %316 = vsyncadd [#allocation3], 4294965120 }
   0xb   :  { %317 = dma.done.wait [#allocation6], 2048  }
   0xc   :  { %318 = vsyncadd [#allocation6], 4294965248  ;;  %v79_v0 = vld [vmem:[#allocation5 + $0x78] sm:$0xff]  ;;  %v78_v1 = vld [vmem:[#allocation5 + $0x70] sm:$0xff]  ;;  %s175_s27 = sshll.u32 %s370_s3, 4  ;;  %s176_s27 = int_to_ptr.hbm [resolvable:$true] %s175_s27 }
   0xd   :  { %190 = vmatpush.msra.mxu2 %v79_v0  ;;  %191 = vmatpush.msra.mxu3 %v79_v0  ;;  %v77_v2 = vld [vmem:[#allocation5 + $0x68] sm:$0xff]  ;;  %v76_v3 = vld [vmem:[#allocation5 + $0x60] sm:$0xff]  ;;  %v75_v4 = vld [vmem:[#allocation5 + $0x58] sm:$0xff] }
   0xe   :  { %189 = vmatpush.msra.mxu1 %v79_v0  ;;  %84 = vmatpush.msra.mxu0 %v79_v0  ;;  %v74_v5 = vld [vmem:[#allocation5 + $0x50] sm:$0xff]  ;;  %v73_v6 = vld [vmem:[#allocation5 + $0x48] sm:$0xff]  ;;  %v72_v7 = vld [vmem:[#allocation5 + $0x40] sm:$0xff] }
   0xf   :  { %193 = vmatpush.msra.mxu2 %v78_v1  ;;  %194 = vmatpush.msra.mxu3 %v78_v1  ;;  %v71_v8 = vld [vmem:[#allocation5 + $0x38] sm:$0xff]  ;;  %v70_v9 = vld [vmem:[#allocation5 + $0x30] sm:$0xff]  ;;  %v69_v10 = vld [vmem:[#allocation5 + $0x28] sm:$0xff] }
  0x10   :  { %192 = vmatpush.msra.mxu1 %v78_v1  ;;  %85 = vmatpush.msra.mxu0 %v78_v1  ;;  %v68_v11 = vld [vmem:[#allocation5 + $0x20] sm:$0xff]  ;;  %v67_v12 = vld [vmem:[#allocation5 + $0x18] sm:$0xff]  ;;  %v66_v13 = vld [vmem:[#allocation5 + $0x10] sm:$0xff] }
  0x11   :  { %196 = vmatpush.msra.mxu2 %v77_v2  ;;  %197 = vmatpush.msra.mxu3 %v77_v2  ;;  %v65_v14 = vld [vmem:[#allocation5 + $0x8] sm:$0xff]  ;;  %v64_v15 = vld [vmem:[#allocation5] sm:$0xff]  ;;  %v54_v16 = vld [vmem:[#allocation2 + $0x38] sm:$0xff] }
  0x12   :  { %195 = vmatpush.msra.mxu1 %v77_v2  ;;  %86 = vmatpush.msra.mxu0 %v77_v2  ;;  %v59_v17 = vld [vmem:[#allocation2 + $0x60] sm:$0xff]  ;;  %v50_v18 = vld [vmem:[#allocation2 + $0x18] sm:$0xff]  ;;  %v60_v21 = vld [vmem:[#allocation2 + $0x68] sm:$0xff] }
  0x13   :  { %199 = vmatpush.msra.mxu2 %v76_v3  ;;  %200 = vmatpush.msra.mxu3 %v76_v3  ;;  %v47_v19 = vld [vmem:[#allocation2] sm:$0xff]  ;;  %v48_v23 = vld [vmem:[#allocation2 + $0x8] sm:$0xff]  ;;  %v61_v25 = vld [vmem:[#allocation2 + $0x70] sm:$0xff] }
  0x14   :  { %198 = vmatpush.msra.mxu1 %v76_v3  ;;  %87 = vmatpush.msra.mxu0 %v76_v3  ;;  %v55_v20 = vld [vmem:[#allocation2 + $0x40] sm:$0xff]  ;;  %v56_v24 = vld [vmem:[#allocation2 + $0x48] sm:$0xff]  ;;  %v49_v27 = vld [vmem:[#allocation2 + $0x10] sm:$0xff] }
  0x15   :  { %202 = vmatpush.msra.mxu2 %v75_v4  ;;  %203 = vmatpush.msra.mxu3 %v75_v4  ;;  %v51_v22 = vld [vmem:[#allocation2 + $0x20] sm:$0xff]  ;;  %v52_v26 = vld [vmem:[#allocation2 + $0x28] sm:$0xff]  ;;  %v57_v28 = vld [vmem:[#allocation2 + $0x50] sm:$0xff] }
  0x16   :  { %201 = vmatpush.msra.mxu1 %v75_v4  ;;  %88 = vmatpush.msra.mxu0 %v75_v4  ;;  %v62_v29 = vld [vmem:[#allocation2 + $0x78] sm:$0xff]  ;;  %v53_v30 = vld [vmem:[#allocation2 + $0x30] sm:$0xff]  ;;  %v63_v32 = vld [vmem:[#allocation2 + $0x80] sm:$0xff] }
  0x17   :  { %205 = vmatpush.msra.mxu2 %v74_v5  ;;  %206 = vmatpush.msra.mxu3 %v74_v5  ;;  %v58_v31 = vld [vmem:[#allocation2 + $0x58] sm:$0xff]  ;;  %v242_v33 = vld [vmem:[%s369_s2] ss:$0 sm:$0xff]  ;;  %s325_s2 = smov [#allocation7]  }
  0x18   :  { %204 = vmatpush.msra.mxu1 %v74_v5  ;;  %89 = vmatpush.msra.mxu0 %v74_v5  ;;  %s173_s24 = sshll.u32 %s325_s2, 4  ;;  %s174_s24 = int_to_ptr.vmem [resolvable:$true] %s173_s24 }
  0x19   :  { %208 = vmatpush.msra.mxu2 %v73_v6  ;;  %209 = vmatpush.msra.mxu3 %v73_v6 }
  0x1a   :  { %207 = vmatpush.msra.mxu1 %v73_v6  ;;  %90 = vmatpush.msra.mxu0 %v73_v6 }
  0x1b   :  { %211 = vmatpush.msra.mxu2 %v72_v7  ;;  %212 = vmatpush.msra.mxu3 %v72_v7 }
  0x1c   :  { %210 = vmatpush.msra.mxu1 %v72_v7  ;;  %91 = vmatpush.msra.mxu0 %v72_v7 }
  0x1d   :  { %214 = vmatpush.msra.mxu2 %v71_v8  ;;  %215 = vmatpush.msra.mxu3 %v71_v8 }
  0x1e   :  { %213 = vmatpush.msra.mxu1 %v71_v8  ;;  %92 = vmatpush.msra.mxu0 %v71_v8 }
  0x1f   :  { %217 = vmatpush.msra.mxu2 %v70_v9  ;;  %218 = vmatpush.msra.mxu3 %v70_v9 }
  0x20   :  { %216 = vmatpush.msra.mxu1 %v70_v9  ;;  %93 = vmatpush.msra.mxu0 %v70_v9 }
  0x21   :  { %220 = vmatpush.msra.mxu2 %v69_v10  ;;  %221 = vmatpush.msra.mxu3 %v69_v10 }
  0x22   :  { %219 = vmatpush.msra.mxu1 %v69_v10  ;;  %94 = vmatpush.msra.mxu0 %v69_v10 }
  0x23   :  { %223 = vmatpush.msra.mxu2 %v68_v11  ;;  %224 = vmatpush.msra.mxu3 %v68_v11 }
  0x24   :  { %222 = vmatpush.msra.mxu1 %v68_v11  ;;  %95 = vmatpush.msra.mxu0 %v68_v11 }
  0x25   :  { %226 = vmatpush.msra.mxu2 %v67_v12  ;;  %227 = vmatpush.msra.mxu3 %v67_v12 }
  0x26   :  { %225 = vmatpush.msra.mxu1 %v67_v12  ;;  %96 = vmatpush.msra.mxu0 %v67_v12 }
  0x27   :  { %229 = vmatpush.msra.mxu2 %v66_v13  ;;  %230 = vmatpush.msra.mxu3 %v66_v13 }
  0x28   :  { %228 = vmatpush.msra.mxu1 %v66_v13  ;;  %97 = vmatpush.msra.mxu0 %v66_v13 }
  0x29   :  { %232 = vmatpush.msra.mxu2 %v65_v14  ;;  %233 = vmatpush.msra.mxu3 %v65_v14 }
  0x2a   :  { %231 = vmatpush.msra.mxu1 %v65_v14  ;;  %98 = vmatpush.msra.mxu0 %v65_v14 }
  0x2b   :  { %235 = vmatpush.msra.mxu2 %v64_v15  ;;  %236 = vmatpush.msra.mxu3 %v64_v15 }
  0x2c   :  { %121 = vmatmul.f32.vlgmr.msra.gmra.mxu2 %v54_v16  ;;  %136 = vmatmul.f32.vlgmr.msra.gmra.mxu3 %v59_v17 }
  0x2d   :  { %234 = vmatpush.msra.mxu1 %v64_v15  ;;  %99 = vmatpush.msra.mxu0 %v64_v15 }
  0x2e   :  { %109 = vmatmul.f32.vlgmr.msra.gmra.mxu1 %v50_v18  ;;  %100 = vmatmul.f32.vlgmr.msra.gmra.mxu0 %v47_v19 }
  0x34   :  { %124 = vmatmul.f32.gmra.mxu2 %v55_v20  ;;  %139 = vmatmul.f32.gmra.mxu3 %v60_v21 }
  0x36   :  { %112 = vmatmul.f32.gmra.mxu1 %v51_v22  ;;  %103 = vmatmul.f32.gmra.mxu0 %v48_v23 }
  0x3c   :  { %127 = vmatmul.f32.gmra.mxu2 %v56_v24  ;;  %142 = vmatmul.f32.gmra.mxu3 %v61_v25 }
  0x3e   :  { %115 = vmatmul.f32.gmra.mxu1 %v52_v26  ;;  %106 = vmatmul.f32.gmra.mxu0 %v49_v27 }
  0x44   :  { %130 = vmatmul.f32.gmra.mxu2 %v57_v28  ;;  %145 = vmatmul.f32.gmra.mxu3 %v62_v29 }
  0x46   :  { %118 = vmatmul.f32.gmra.mxu1 %v53_v30 }
  0x4c   :  { %133 = vmatmul.f32.gmra.mxu2 %v58_v31  ;;  %148 = vmatmul.f32.gmra.mxu3 %v63_v32 }
  0xab   :  { %v110_v34 = vpop.f32.mrf.mxu1  ;;  %v101_v35 = vpop.f32.mrf.mxu0 }
  0xac   :  { %v111_v36 = vadd.f32 %v242_v33, %v110_v34  ;;  %v102_v37 = vadd.f32 %v242_v33, %v101_v35 }
  0xae   :  { %155 = vst [vmem:[#allocation7 + $0x18] sm:$0xff] %v111_v36 }
  0xaf   :  { %v122_v38 = vpop.f32.mrf.mxu2  ;;  %v137_v39 = vpop.f32.mrf.mxu3  ;;  %152 = vst [vmem:[#allocation7] sm:$0xff] %v102_v37 }
  0xb0   :  { %v123_v40 = vadd.f32 %v242_v33, %v122_v38  ;;  %v138_v41 = vadd.f32 %v242_v33, %v137_v39 }
  0xb2   :  { %159 = vst [vmem:[#allocation7 + $0x38] sm:$0xff] %v123_v40 }
  0xb3   :  { %164 = vst [vmem:[#allocation7 + $0x60] sm:$0xff] %v138_v41  ;;  %v113_v42 = vpop.f32.mrf.mxu1  ;;  %v104_v43 = vpop.f32.mrf.mxu0 }
  0xb4   :  { %v114_v44 = vadd.f32 %v242_v33, %v113_v42  ;;  %v105_v45 = vadd.f32 %v242_v33, %v104_v43 }
  0xb6   :  { %156 = vst [vmem:[#allocation7 + $0x20] sm:$0xff] %v114_v44 }
  0xb7   :  { %v125_v46 = vpop.f32.mrf.mxu2  ;;  %v140_v47 = vpop.f32.mrf.mxu3  ;;  %153 = vst [vmem:[#allocation7 + $0x8] sm:$0xff] %v105_v45 }
  0xb8   :  { %v126_v48 = vadd.f32 %v242_v33, %v125_v46  ;;  %v141_v49 = vadd.f32 %v242_v33, %v140_v47 }
  0xba   :  { %160 = vst [vmem:[#allocation7 + $0x40] sm:$0xff] %v126_v48 }
  0xbb   :  { %165 = vst [vmem:[#allocation7 + $0x68] sm:$0xff] %v141_v49  ;;  %v116_v50 = vpop.f32.mrf.mxu1  ;;  %v107_v51 = vpop.f32.mrf.mxu0 }
  0xbc   :  { %v117_v52 = vadd.f32 %v242_v33, %v116_v50  ;;  %v108_v53 = vadd.f32 %v242_v33, %v107_v51 }
  0xbe   :  { %157 = vst [vmem:[#allocation7 + $0x28] sm:$0xff] %v117_v52 }
  0xbf   :  { %v128_v54 = vpop.f32.mrf.mxu2  ;;  %v143_v55 = vpop.f32.mrf.mxu3  ;;  %154 = vst [vmem:[#allocation7 + $0x10] sm:$0xff] %v108_v53 }
  0xc0   :  { %v129_v56 = vadd.f32 %v242_v33, %v128_v54  ;;  %v144_v57 = vadd.f32 %v242_v33, %v143_v55 }
  0xc2   :  { %161 = vst [vmem:[#allocation7 + $0x48] sm:$0xff] %v129_v56 }
  0xc3   :  { %166 = vst [vmem:[#allocation7 + $0x70] sm:$0xff] %v144_v57  ;;  %v119_v58 = vpop.f32.mrf.mxu1 }
  0xc4   :  { %v120_v59 = vadd.f32 %v242_v33, %v119_v58 }
  0xc6   :  { %158 = vst [vmem:[#allocation7 + $0x30] sm:$0xff] %v120_v59 }
  0xc7   :  { %v131_v60 = vpop.f32.mrf.mxu2  ;;  %v146_v61 = vpop.f32.mrf.mxu3 }
  0xc8   :  { %v132_v62 = vadd.f32 %v242_v33, %v131_v60  ;;  %v147_v63 = vadd.f32 %v242_v33, %v146_v61 }
  0xca   :  { %162 = vst [vmem:[#allocation7 + $0x50] sm:$0xff] %v132_v62 }
  0xcb   :  { %167 = vst [vmem:[#allocation7 + $0x78] sm:$0xff] %v147_v63 }
  0xcf   :  { %v134_v0 = vpop.f32.mrf.mxu2  ;;  %v149_v1 = vpop.f32.mrf.mxu3 }
  0xd0   :  { %v135_v2 = vadd.f32 %v242_v33, %v134_v0  ;;  %v150_v3 = vadd.f32 %v242_v33, %v149_v1 }
  0xd2   :  { %163 = vst [vmem:[#allocation7 + $0x58] sm:$0xff] %v135_v2 }
  0xd3   :  { %168 = vst [vmem:[#allocation7 + $0x80] sm:$0xff] %v150_v3 }
  0xd4   :  { %181 = dma.vmem_to_hbm [thread:$0]  %s174_s24, 2176, %s176_s27, [#allocation4], %s322_s20, %s322_s20, %s323_s21  }
  0xd5   :  { %319 = dma.done.wait [#allocation4], 2176  }
  0xd6   :  { %320 = vsyncadd [#allocation4], 4294965120 }
  0xd7   :  { %186 = vsyncpa [#allocation3], 1 }
  0xd8   :  { %187 = vsyncpa [#allocation6], 1 }
  0xd9   :  { %188 = vsyncpa [#allocation4], 1 }

</bundles_post_ra>
